<compile_context>
chip_gen: v6e
topology: v6e:2x2x1
jax: 0.10.0
libtpu: 0.0.40
codegen_flags: <defaults>
</compile_context>

<pallas_src>
import functools

import jax
import jax.numpy as jnp
from jax.experimental import pallas as pl
from jax.experimental.pallas import tpu as pltpu


def _cdiv(a, b):
    return -(-a // b)


def _round_up(x, m):
    return (x + m - 1) // m * m


def _lowest(dtype):
    """Identity element for max in `dtype` (python scalar)."""
    dtype = jnp.dtype(dtype)
    if jnp.issubdtype(dtype, jnp.floating):
        # -inf is exact where representable; fp8-style formats without an inf
        # would turn -inf into NaN, so fall back to the finite minimum there.
        if dtype in (jnp.dtype(jnp.float64), jnp.dtype(jnp.float32),
                     jnp.dtype(jnp.bfloat16), jnp.dtype(jnp.float16)):
            return float("-inf")
        return float(jnp.finfo(dtype).min)
    if jnp.issubdtype(dtype, jnp.bool_):
        return False
    return int(jnp.iinfo(dtype).min)


def _max_kernel(x_ref, o_ref, acc_ref, *, lowest, true_f, tf, n_feat_tiles):
    """Row-wise max, reduced over the feature (last, 'arbitrary') grid axis."""
    k = pl.program_id(1)

    @pl.when(k == 0)
    def _():
        acc_ref[...] = jnp.full(acc_ref.shape, lowest, acc_ref.dtype)

    fill = None
    m = None
    n_chunks = tf // 128
    for j in range(n_chunks):
        # Static Ref slice (free) -> one (TB, 128) column live at a time.
        chunk = x_ref[:, j * 128:(j + 1) * 128]
        # Only chunks that can run past the true feature extent (statically known
        # from n_feat_tiles/tf/true_f) get a mask; dynamic k keeps it a no-op on
        # interior feature tiles.
        if (n_feat_tiles - 1) * tf + (j + 1) * 128 > true_f:
            if fill is None:
                fill = jnp.asarray(lowest, chunk.dtype)
            col = (k * tf + j * 128
                   + jax.lax.broadcasted_iota(jnp.int32, (1, 128), 1))
            chunk = jnp.where(col < true_f, chunk, fill)
        m = chunk if m is None else jnp.maximum(m, chunk)
    acc_ref[...] = jnp.maximum(acc_ref[...], m)

    # Single cross-lane (XLU) reduce + single store, once per batch tile.
    @pl.when(k == n_feat_tiles - 1)
    def _():
        o_ref[...] = jnp.max(acc_ref[...], axis=1, keepdims=True).astype(o_ref.dtype)


def _max_layer_pallas(x, *, tb_max=512, tf_max=4096):
    """Tiled, pipelined Pallas path for max over dim=1 (keepdim=True)."""
    B, F = x.shape
    dtype = x.dtype
    itemsize = jnp.dtype(dtype).itemsize
    # Packed sublane multiple: 8 for 4-byte, 16 for 2-byte, 32 for 1-byte dtypes.
    sub = {4: 8, 2: 16, 1: 32}.get(itemsize, 8)

    # Feature tile: balance via cdiv, round to a lane multiple (caps over-read of
    # the ragged last tile at <128 lanes).
    ntf = _cdiv(F, tf_max)
    tf = min(tf_max, _round_up(_cdiv(F, ntf), 128))
    n_feat_tiles = _cdiv(F, tf)

    # Batch tile: aim for >=2 tiles so both v7x TensorCores get work.
    nb_target = max(_cdiv(B, tb_max), 2)
    tb = max(sub, min(tb_max, _round_up(_cdiv(B, nb_target), sub)))
    n_batch_tiles = _cdiv(B, tb)

    kernel = functools.partial(
        _max_kernel, lowest=_lowest(dtype), true_f=F, tf=tf,
        n_feat_tiles=n_feat_tiles)

    return pl.pallas_call(
        kernel,
        out_shape=jax.ShapeDtypeStruct((B, 1), dtype),
        grid=(n_batch_tiles, n_feat_tiles),
        in_specs=[pl.BlockSpec((tb, tf), lambda i, k: (i, k))],
        out_specs=pl.BlockSpec((tb, 1), lambda i, k: (i, 0)),
        scratch_shapes=[pltpu.VMEM((tb, 128), dtype)],
        compiler_params=pltpu.CompilerParams(
            dimension_semantics=("parallel", "arbitrary"),
            vmem_limit_bytes=32 * 1024 * 1024),
        cost_estimate=pl.CostEstimate(
            flops=B * F, transcendentals=0,
            bytes_accessed=(B * F + B) * itemsize),
    )(x)


# Below this, pallas_call fixed overhead (~us) dominates a ~KiB reduction.
_PALLAS_MIN_BYTES = 1 << 20  # 1 MiB


def max_layer_forward(x, *, force_pallas=False):
    """MaxLayer.forward: max over dim=1, keepdim=True."""
    if not force_pallas and x.size * jnp.dtype(x.dtype).itemsize < _PALLAS_MIN_BYTES:
        # Tiny input: skip the custom-call / grid-step overhead entirely.
        return jnp.max(x, axis=1, keepdims=True)
    return _max_layer_pallas(x)


class MaxLayerPallas:
    """Mirror of the PyTorch MaxLayer module (weight/bias exist but are unused in forward)."""

    def __init__(self, in_features, out_features, key):
        # Matches torch.randn(in_features, out_features) / torch.zeros(out_features) shapes.
        self.weight = jax.random.normal(key, (in_features, out_features), jnp.float32)
        self.bias = jnp.zeros((out_features,), jnp.float32)

    def __call__(self, x, **kw):
        return max_layer_forward(x, **kw)


if __name__ == "__main__":
    key = jax.random.PRNGKey(0)
    k_param, k_x1, k_x2, k_x3 = jax.random.split(key, 4)

    batch, in_features, out_features = 8, 32, 16
    layer = MaxLayerPallas(in_features, out_features, k_param)

    # 1) Module-sized input through the Pallas kernel (single feature tile, masked
    #    ragged lanes 32..127), plus the tiny-input auto-dispatch path.
    x_small = jax.random.normal(k_x1, (batch, in_features), jnp.float32)
    ref_small = jnp.max(x_small, axis=1, keepdims=True)
    out_small = jax.block_until_ready(layer(x_small, force_pallas=True))
    assert out_small.shape == (batch, 1), out_small.shape
    assert jnp.allclose(out_small, ref_small)
    assert jnp.allclose(jax.block_until_ready(layer(x_small)), ref_small)

    # 2) Ragged batch + ragged feature edge (2 batch tiles, partial blocks).
    x_rag = jax.random.normal(k_x2, (130, 400), jnp.float32)
    out_rag = jax.block_until_ready(layer(x_rag, force_pallas=True))
    assert out_rag.shape == (130, 1), out_rag.shape
    assert jnp.allclose(out_rag, jnp.max(x_rag, axis=1, keepdims=True))

    # 3) Multi-feature-tile resident-accumulator path with a masked last tile
    #    (small tiles forced so the reduction spans 3 grid steps).
    x_multi = jax.random.normal(k_x3, (48, 700), jnp.float32)
    out_multi = jax.block_until_ready(
        _max_layer_pallas(x_multi, tb_max=32, tf_max=256))
    assert out_multi.shape == (48, 1), out_multi.shape
    assert jnp.allclose(out_multi, jnp.max(x_multi, axis=1, keepdims=True))

    print("KERNEL_OK")
</pallas_src>

<mosaic_0001>
module attributes {stable_mosaic.version = 11 : i64} {
  func.func @_max_kernel(%arg0: i32, %arg1: i32, %arg2: memref<8x128xf32, #tpu.memory_space<vmem>>, %arg3: memref<8x1xf32, #tpu.memory_space<vmem>>, %arg4: memref<8x128xf32, #tpu.memory_space<vmem>>) attributes {dimension_semantics = [#tpu.dimension_semantics<parallel>, #tpu.dimension_semantics<arbitrary>], iteration_bounds = array<i64: 1, 1>, scalar_prefetch = 0 : i64, scratch_operands = 1 : i64, tpu.core_type = #tpu.core_type<tc>, window_params = [{transform_indices = @transform_0, window_bounds = array<i64: 8, 128>}, {transform_indices = @transform_1, window_bounds = array<i64: 8, 1>}]} {
    %c0_i32 = arith.constant 0 : i32
    %0 = arith.cmpi eq, %arg1, %c0_i32 : i32
    %1 = arith.extui %0 : i1 to i32
    %c0_i32_0 = arith.constant 0 : i32
    %2 = arith.cmpi ne, %1, %c0_i32_0 : i32
    scf.if %2 {
      %cst_9 = arith.constant 0xFF800000 : f32
      %21 = vector.broadcast %cst_9 : f32 to vector<8x128xf32>
      %c0_10 = arith.constant 0 : index
      %c0_11 = arith.constant 0 : index
      %22 = vector.load %arg4[%c0_10, %c0_11] : memref<8x128xf32, #tpu.memory_space<vmem>>, vector<8x128xf32>
      tpu.vector_store %arg4[%c0_10, %c0_11], %21 {strides = array<i32>} : memref<8x128xf32, #tpu.memory_space<vmem>>, vector<8x128xf32>,
    } else {
    }
    %c0 = arith.constant 0 : index
    %c0_1 = arith.constant 0 : index
    %3 = vector.load %arg2[%c0, %c0_1] : memref<8x128xf32, #tpu.memory_space<vmem>>, vector<8x128xf32>
    %c128_i32 = arith.constant 128 : i32
    %4 = arith.muli %arg1, %c128_i32 : i32
    %c0_i32_2 = arith.constant 0 : i32
    %5 = arith.addi %4, %c0_i32_2 : i32
    %6 = tpu.iota {dimensions = array<i32: 1>} : vector<1x128xi32>
    %7 = vector.broadcast %5 : i32 to vector<1x128xi32>
    %8 = arith.addi %7, %6 : vector<1x128xi32>
    %c32_i32 = arith.constant 32 : i32
    %9 = vector.broadcast %c32_i32 : i32 to vector<1x128xi32>
    %10 = arith.cmpi slt, %8, %9 : vector<1x128xi32>
    %cst = arith.constant 0xFF800000 : f32
    %11 = vector.shape_cast %10 : vector<1x128xi1> to vector<1x128xi1>
    %12 = vector.broadcast %11 : vector<1x128xi1> to vector<8x128xi1>
    %13 = vector.broadcast %cst : f32 to vector<8x128xf32>
    %14 = arith.select %12, %3, %13 : vector<8x128xi1>, vector<8x128xf32>
    %c0_3 = arith.constant 0 : index
    %c0_4 = arith.constant 0 : index
    %15 = vector.load %arg4[%c0_3, %c0_4] : memref<8x128xf32, #tpu.memory_space<vmem>>, vector<8x128xf32>
    %16 = arith.maximumf %15, %14 : vector<8x128xf32>
    %c0_5 = arith.constant 0 : index
    %c0_6 = arith.constant 0 : index
    %17 = vector.load %arg4[%c0_5, %c0_6] : memref<8x128xf32, #tpu.memory_space<vmem>>, vector<8x128xf32>
    tpu.vector_store %arg4[%c0_5, %c0_6], %16 {strides = array<i32>} : memref<8x128xf32, #tpu.memory_space<vmem>>, vector<8x128xf32>,
    %c0_i32_7 = arith.constant 0 : i32
    %18 = arith.cmpi eq, %arg1, %c0_i32_7 : i32
    %19 = arith.extui %18 : i1 to i32
    %c0_i32_8 = arith.constant 0 : i32
    %20 = arith.cmpi ne, %19, %c0_i32_8 : i32
    scf.if %20 {
      %c0_9 = arith.constant 0 : index
      %c0_10 = arith.constant 0 : index
      %21 = vector.load %arg4[%c0_9, %c0_10] : memref<8x128xf32, #tpu.memory_space<vmem>>, vector<8x128xf32>
      %cst_11 = arith.constant dense<0xFF800000> : vector<8xf32>
      %22 = vector.multi_reduction <maximumf>, %21, %cst_11 [1] : vector<8x128xf32> to vector<8xf32>
      %23 = vector.shape_cast %22 : vector<8xf32> to vector<8x1xf32>
      %c0_12 = arith.constant 0 : index
      %c0_13 = arith.constant 0 : index
      %24 = vector.load %arg3[%c0_12, %c0_13] : memref<8x1xf32, #tpu.memory_space<vmem>>, vector<8x1xf32>
      tpu.vector_store %arg3[%c0_12, %c0_13], %23 {strides = array<i32>} : memref<8x1xf32, #tpu.memory_space<vmem>>, vector<8x1xf32>,
    } else {
    }
    return
  }
  func.func @transform_0(%arg0: i32, %arg1: i32) -> (i32, i32) {
    %c0_i32 = arith.constant 0 : i32
    return %arg0, %arg1 : i32, i32
  }
  func.func @transform_1(%arg0: i32, %arg1: i32) -> (i32, i32) {
    %c0_i32 = arith.constant 0 : i32
    %c0_i32_0 = arith.constant 0 : i32
    return %arg0, %c0_i32 : i32, i32
  }
}

</mosaic_0001>

<bundles_post_ra>
// kernel: tpu_custom_call.1
= control target key start
LH: loop header
LB: loop body
LE: loop exit
PB: predicated region body
PF: predicated region fallthrough
CT: control target
= control target key end

     0   :  { %6 = vsyncpa [#allocation4], 0  ;;  %s74_s6 = smov [#allocation3]   ;;  %s91_s0 = inlined_call_operand.hbm [shape: f32[8,32], index: 0, kind: input, shape index: {}]   ;;  %s92_s1 = inlined_call_operand.vmem [shape: f32[8,1], index: 1, kind: output, shape index: {}]  }
   0x1   :  { %s13_s7 = sshll.u32 %s74_s6, 4  ;;  %s14_s7 = int_to_ptr.vmem [resolvable:$true] %s13_s7 }
   0x2   :  { %s60_s8 = scalar_lea.vmem %s14_s7, 128  ;;  %p65_p1 = scmp.lt.s32.totalorder %s14_s7, %s14_s7 }
   0x3   :  { %p61_p0 = scmp.ne.s32.totalorder %s14_s7, %s60_s8  ;;  %p66_p2 = scmp.lt.s32.totalorder %s60_s8, %s60_s8 }
   0x5   :  { %p67_p3 = por %p66_p2, %p65_p1 }
   0x7   :  { %p68_p4 = pnand %p67_p3, %p61_p0 }
   0x9   :  { %71 = shalt.err (!%p68_p4)
}
   0xa   :  { %16 = dma.hbm_to_vmem [thread:$0]  %s91_s0, 128, %s14_s7, [#allocation4]  }
   0xb   :  { %72 = dma.done.wait [#allocation4], 128  }
   0xc   :  { %73 = vsyncadd [#allocation4], 4294967168  ;;  %v27_v0 = vlaneseq  ;;  %v25_v2 = vld [vmem:[#allocation3] sm:$0xff]  ;;  %vm44_vm1 = vcmask 7168  }
   0xe   :  { %v28_v1 = vand.u32 127, %v27_v0 }
  0x10   :  { %vm31_vm0 = vcmp.lt.s32.totalorder %v28_v1, 32 }
  0x11   :  { %v34_v3 = vsel %vm31_vm0, %v25_v2, -inf }
  0x12   :  { %42 = vmax.xlane.f32.xlu0 %v34_v3 }
  0x9b   :  { %v43_v4 = vpop.xlane.xlu0 %42 }
  0x9c   :  { %45 = vst.msk [vmem:[%s92_s1] sm:$0xff] %vm44_vm1, %v43_v4 }
  0x9d   :  { %50 = vsyncpa [#allocation4], 1 }

</bundles_post_ra>
